<compile_context>
chip_gen: v6e
topology: v6e:2x2x1
jax: 0.10.0
libtpu: 0.0.40
codegen_flags: <defaults>
</compile_context>

<pallas_src>
import functools

import numpy as np
import jax
import jax.numpy as jnp
from jax.experimental import pallas as pl
from jax.experimental.pallas import tpu as pltpu


# ----------------------------------------------------------------------------
# Kernels
# ----------------------------------------------------------------------------
def _posenc_add_lane_dense_kernel(x_ref, pe_ref, o_ref, *, batch: int,
                                  d_model: int):
    """x_ref/o_ref: (TS, B*D); pe_ref: (TS, D). D is a multiple of 128.

    Static per-batch loop of lane-aligned slice adds: offsets are multiples
    of D (itself a multiple of 128), so every load/store is a full-lane view
    and no tile-sized VMEM temp is materialized.
    """
    pe = pe_ref[...]
    if batch == 1:
        o_ref[...] = x_ref[...] + pe
    else:
        for b in range(batch):          # static unroll; batch is small in SONATA
            sl = slice(b * d_model, (b + 1) * d_model)
            o_ref[:, sl] = x_ref[:, sl] + pe


def _posenc_add_kernel(x_ref, pe_ref, o_ref):
    """Generic add (equal shapes, or pe broadcasting over a size-1 batch dim)."""
    o_ref[...] = x_ref[...] + pe_ref[...]


# ----------------------------------------------------------------------------
# Host-side helpers
# ----------------------------------------------------------------------------
def make_pe(max_len: int, d_model: int, dtype=jnp.float32) -> jnp.ndarray:
    """Deterministic sinusoidal table, same math as the PyTorch __init__.

    Build it once in the model dtype so the forward path never re-casts the
    table per call.
    """
    position = np.arange(max_len, dtype=np.float64)[:, None]              # (max_len, 1)
    div_term = np.exp(np.arange(0, d_model, 2, dtype=np.float64)
                      * (-np.log(10000.0) / d_model))                     # (d_model//2,)
    pe = np.zeros((max_len, 1, d_model), dtype=np.float64)
    pe[:, 0, 0::2] = np.sin(position * div_term)
    pe[:, 0, 1::2] = np.cos(position * div_term)
    return jnp.asarray(pe, dtype=dtype)


def _round_up(x: int, m: int) -> int:
    return ((x + m - 1) // m) * m


def _sublane_multiple(itemsize: int) -> int:
    # f32 -> 8, bf16 -> 16, int8/fp8 -> 32 (sub-32-bit dtypes pack along sublanes).
    return max(8, 32 // max(itemsize, 1))


def _row_tile(n_rows: int, row_bytes: int, target_bytes: int,
              sublane_mult: int) -> int:
    """Largest row tile (multiple of sublane_mult, or full extent) within target."""
    if n_rows <= sublane_mult:
        return n_rows       # full extent satisfies the (8,128) rule
    rows = max(sublane_mult, min(n_rows, target_bytes // max(row_bytes, 1)))
    rows = (rows // sublane_mult) * sublane_mult
    return max(sublane_mult, min(rows, n_rows))


@functools.lru_cache(maxsize=1)
def _vmem_capacity_bytes() -> int:
    try:
        info = pltpu.get_tpu_info()
        for name in ("vmem_capacity_bytes", "vmem_bytes", "vmem_size_bytes"):
            cap = getattr(info, name, None)
            if cap:
                return int(cap)
    except Exception:
        pass
    return 64 << 20     # conservative default: v7x per-TensorCore VMEM


def positional_encoding_forward(x: jnp.ndarray,
                                pe: jnp.ndarray,
                                *,
                                target_tile_bytes: int | None = None,
                                xla_fuse_below_bytes: int = 0) -> jnp.ndarray:
    """x: (S, B, D); pe: (max_len, 1, D). Returns x + pe[:S] (broadcast over B)."""
    S, B, D = x.shape
    max_len = pe.shape[0]
    assert S <= max_len, "sequence length exceeds the positional-encoding table"

    if pe.dtype != x.dtype:
        # Fallback only — callers should build/cache the table in the model
        # dtype (make_pe(dtype=...)). Note: adding in x.dtype (bf16) differs
        # from PyTorch promotion (bf16 + f32 -> f32); accepted divergence.
        pe = pe.astype(x.dtype)

    itemsize = np.dtype(x.dtype).itemsize
    if xla_fuse_below_bytes and S * B * D * itemsize < xla_fuse_below_bytes:
        # Tiny tensors (the SONATA spec: S<=32, small B): a standalone kernel
        # is pure launch overhead; let XLA fuse the add into neighboring ops.
        return x + pe[:S]

    sublane_mult = _sublane_multiple(itemsize)
    vmem_cap = _vmem_capacity_bytes()
    small_vmem = vmem_cap <= (64 << 20)                   # v7x
    vmem_limit_cap = (48 << 20) if small_vmem else (64 << 20)
    if target_tile_bytes is None:
        target_tile_bytes = (4 << 20) if small_vmem else (8 << 20)
    # Never pick a tile whose double-buffered in+out+pe exceeds the limit.
    target_tile_bytes = min(target_tile_bytes,
                            max(64 << 10, (vmem_limit_cap - (4 << 20)) // 6))

    lane_dense = (D % 128 == 0)
    tiled_pe = (not lane_dense) and ((B * D) % 128 == 0)

    if lane_dense or tiled_pe:
        # ---- lane-dense path: view the tensor as (S, B*D), tile over S ----
        x2 = x.reshape(S, B * D)                  # contiguous reshape: no copy
        if lane_dense:
            pe2 = pe.reshape(max_len, D)          # [:S] via index_map / grid
            pe_cols = D
            kernel = functools.partial(_posenc_add_lane_dense_kernel,
                                       batch=B, d_model=D)
        else:
            # D not a lane multiple but B*D is (e.g. D=64, B=4): replicate pe
            # across the batch on the host so the output stays lane-dense.
            pe2 = jnp.tile(pe.reshape(max_len, D), (1, B))
            pe_cols = B * D
            kernel = _posenc_add_kernel

        row_bytes = B * D * itemsize
        ts = _row_tile(S, row_bytes, target_tile_bytes, sublane_mult)
        # Guarantee >=2 grid blocks when there is enough work so the
        # "parallel" axis can shard across v7x's two TensorCores.
        if S > 2 * sublane_mult and S * row_bytes > (1 << 20):
            ts = min(ts, _round_up(pl.cdiv(S, 2), sublane_mult))
        grid = (pl.cdiv(S, ts),)

        x_tile_b = ts * B * D * itemsize
        pe_tile_b = ts * pe_cols * itemsize
        needed = 2 * (2 * x_tile_b + pe_tile_b) + (2 << 20)   # dbl-buffered in+out+pe
        vmem_bytes = int(min(max(needed, 16 << 20), vmem_limit_cap))

        out2 = pl.pallas_call(
            kernel,
            out_shape=jax.ShapeDtypeStruct((S, B * D), x.dtype),
            grid_spec=pl.GridSpec(
                grid=grid,
                in_specs=[
                    pl.BlockSpec((ts, B * D), lambda i: (i, 0)),
                    pl.BlockSpec((ts, pe_cols), lambda i: (i, 0)),
                ],
                out_specs=pl.BlockSpec((ts, B * D), lambda i: (i, 0)),
            ),
            compiler_params=pltpu.CompilerParams(
                dimension_semantics=("parallel",),
                vmem_limit_bytes=vmem_bytes,
            ),
        )(x2, pe2)
        return out2.reshape(S, B, D)

    # ---- full fallback (neither D nor B*D a lane multiple): keep (S, B, D) ----
    row_bytes = B * D * itemsize
    ts = _row_tile(S, row_bytes, target_tile_bytes, sublane_mult)
    if S > 2 * sublane_mult and S * row_bytes > (1 << 20):
        ts = min(ts, _round_up(pl.cdiv(S, 2), sublane_mult))
    grid = (pl.cdiv(S, ts),)
    x_tile_b = ts * B * D * itemsize
    pe_tile_b = ts * D * itemsize
    needed = 2 * (2 * x_tile_b + pe_tile_b) + (2 << 20)
    vmem_bytes = int(min(max(needed, 16 << 20), vmem_limit_cap))

    return pl.pallas_call(
        _posenc_add_kernel,
        out_shape=jax.ShapeDtypeStruct((S, B, D), x.dtype),
        grid_spec=pl.GridSpec(
            grid=grid,
            in_specs=[
                pl.BlockSpec((ts, B, D), lambda i: (i, 0, 0)),
                pl.BlockSpec((ts, 1, D), lambda i: (i, 0, 0)),
            ],
            out_specs=pl.BlockSpec((ts, B, D), lambda i: (i, 0, 0)),
        ),
        compiler_params=pltpu.CompilerParams(
            dimension_semantics=("parallel",),
            vmem_limit_bytes=vmem_bytes,
        ),
    )(x, pe)


# ----------------------------------------------------------------------------
# Demo / self-test
# ----------------------------------------------------------------------------
if __name__ == "__main__":
    key = jax.random.PRNGKey(0)
    k1, k2, k3, k4 = jax.random.split(key, 4)

    # Spec Configuration: d_model=512, max_seq_length=32 (small seq/batch demo).
    max_len, d_model = 32, 512
    seq, batch = 8, 2

    pe_f32 = make_pe(max_len, d_model, dtype=jnp.float32)
    x = jax.random.normal(k1, (seq, batch, d_model), dtype=jnp.float32)
    out = jax.block_until_ready(positional_encoding_forward(x, pe_f32))
    ref = x + pe_f32[:seq]
    np.testing.assert_allclose(np.asarray(out), np.asarray(ref),
                               rtol=1e-6, atol=1e-6)

    # bf16 with the table pre-built in bf16 (hoisted cast); tiny tile target
    # forces a multi-block grid to exercise the pipelined path.
    pe_bf16 = make_pe(max_len, d_model, dtype=jnp.bfloat16)
    x_bf = jax.random.normal(k2, (max_len, batch, d_model), dtype=jnp.bfloat16)
    out_bf = jax.block_until_ready(
        positional_encoding_forward(x_bf, pe_bf16, target_tile_bytes=8 * 1024))
    ref_bf = x_bf + pe_bf16[:max_len]
    np.testing.assert_allclose(np.asarray(out_bf, dtype=np.float32),
                               np.asarray(ref_bf, dtype=np.float32),
                               rtol=1e-2, atol=1e-2)

    # Non-divisible S (edge block masked) with another lane-aligned D.
    pe384 = make_pe(max_len, 384, dtype=jnp.float32)
    x3 = jax.random.normal(k3, (20, 3, 384), dtype=jnp.float32)
    out3 = jax.block_until_ready(positional_encoding_forward(x3, pe384))
    np.testing.assert_allclose(np.asarray(out3), np.asarray(x3 + pe384[:20]),
                               rtol=1e-6, atol=1e-6)

    # D % 128 != 0 but (B*D) % 128 == 0 -> host-tiled pe, lane-dense 2-D path.
    pe64 = make_pe(max_len, 64, dtype=jnp.float32)
    x4 = jax.random.normal(k4, (16, 4, 64), dtype=jnp.float32)
    out4 = jax.block_until_ready(positional_encoding_forward(x4, pe64))
    np.testing.assert_allclose(np.asarray(out4), np.asarray(x4 + pe64[:16]),
                               rtol=1e-6, atol=1e-6)

    # Full fallback: neither D nor B*D is a multiple of 128.
    pe96 = make_pe(max_len, 96, dtype=jnp.float32)
    x5 = jax.random.normal(jax.random.PRNGKey(1), (16, 3, 96), dtype=jnp.float32)
    out5 = jax.block_until_ready(positional_encoding_forward(x5, pe96))
    np.testing.assert_allclose(np.asarray(out5), np.asarray(x5 + pe96[:16]),
                               rtol=1e-6, atol=1e-6)

    print("KERNEL_OK")
</pallas_src>

<mosaic_0001>
module attributes {stable_mosaic.version = 11 : i64} {
  func.func @_posenc_add_lane_dense_kernel(%arg0: i32, %arg1: memref<8x1024xf32, #tpu.memory_space<vmem>>, %arg2: memref<8x512xf32, #tpu.memory_space<vmem>>, %arg3: memref<8x1024xf32, #tpu.memory_space<vmem>>) attributes {dimension_semantics = [#tpu.dimension_semantics<parallel>], iteration_bounds = array<i64: 1>, scalar_prefetch = 0 : i64, scratch_operands = 0 : i64, tpu.core_type = #tpu.core_type<tc>, window_params = [{transform_indices = @transform_0, window_bounds = array<i64: 8, 1024>}, {transform_indices = @transform_1, window_bounds = array<i64: 8, 512>}, {transform_indices = @transform_2, window_bounds = array<i64: 8, 1024>}]} {
    %c0 = arith.constant 0 : index
    %c0_0 = arith.constant 0 : index
    %0 = vector.load %arg2[%c0, %c0_0] : memref<8x512xf32, #tpu.memory_space<vmem>>, vector<8x512xf32>
    %c0_1 = arith.constant 0 : index
    %c0_2 = arith.constant 0 : index
    %1 = vector.load %arg1[%c0_1, %c0_2] : memref<8x1024xf32, #tpu.memory_space<vmem>>, vector<8x512xf32>
    %2 = arith.addf %1, %0 : vector<8x512xf32>
    %c0_3 = arith.constant 0 : index
    %c0_4 = arith.constant 0 : index
    %3 = vector.load %arg3[%c0_3, %c0_4] : memref<8x1024xf32, #tpu.memory_space<vmem>>, vector<8x512xf32>
    tpu.vector_store %arg3[%c0_3, %c0_4], %2 {strides = array<i32>} : memref<8x1024xf32, #tpu.memory_space<vmem>>, vector<8x512xf32>,
    %c0_5 = arith.constant 0 : index
    %c512 = arith.constant 512 : index
    %4 = vector.load %arg1[%c0_5, %c512] : memref<8x1024xf32, #tpu.memory_space<vmem>>, vector<8x512xf32>
    %5 = arith.addf %4, %0 : vector<8x512xf32>
    %c0_6 = arith.constant 0 : index
    %c512_7 = arith.constant 512 : index
    %6 = vector.load %arg3[%c0_6, %c512_7] : memref<8x1024xf32, #tpu.memory_space<vmem>>, vector<8x512xf32>
    tpu.vector_store %arg3[%c0_6, %c512_7], %5 {strides = array<i32>} : memref<8x1024xf32, #tpu.memory_space<vmem>>, vector<8x512xf32>,
    return
  }
  func.func @transform_0(%arg0: i32) -> (i32, i32) {
    %c0_i32 = arith.constant 0 : i32
    %c0_i32_0 = arith.constant 0 : i32
    return %arg0, %c0_i32 : i32, i32
  }
  func.func @transform_1(%arg0: i32) -> (i32, i32) {
    %c0_i32 = arith.constant 0 : i32
    %c0_i32_0 = arith.constant 0 : i32
    return %arg0, %c0_i32 : i32, i32
  }
  func.func @transform_2(%arg0: i32) -> (i32, i32) {
    %c0_i32 = arith.constant 0 : i32
    %c0_i32_0 = arith.constant 0 : i32
    return %arg0, %c0_i32 : i32, i32
  }
}

</mosaic_0001>

<bundles_post_ra>
// kernel: tpu_custom_call.1
= control target key start
LH: loop header
LB: loop body
LE: loop exit
PB: predicated region body
PF: predicated region fallthrough
CT: control target
= control target key end

     0   :  { %7 = vsyncpa [#allocation3], 0  ;;  %s176_s0 = inlined_call_operand.hbm [shape: f32[8,1024], index: 0, kind: input, shape index: {}]   ;;  %s177_s1 = inlined_call_operand.hbm [shape: f32[32,512], index: 1, kind: input, shape index: {}]   ;;  %s178_s2 = inlined_call_operand.hbm [shape: f32[8,1024], index: 2, kind: output, shape index: {}]  }
   0x1   :  { %8 = vsyncpa [#allocation6], 0 }
   0x2   :  { %9 = vsyncpa [#allocation4], 0  ;;  %s149_s9 = smov [#allocation2]   ;;  %s150_s11 = smov [#allocation5]  }
   0x3   :  { %s16_s10 = sshll.u32 %s149_s9, 4  ;;  %s26_s12 = sshll.u32 %s150_s11, 4  ;;  %s17_s10 = int_to_ptr.vmem [resolvable:$true] %s16_s10  ;;  %s27_s12 = int_to_ptr.vmem [resolvable:$true] %s26_s12 }
   0x4   :  { %s91_s13 = scalar_lea.vmem %s17_s10, 1024  ;;  %p96_p1 = scmp.lt.s32.totalorder %s17_s10, %s17_s10 }
   0x5   :  { %p92_p0 = scmp.ne.s32.totalorder %s17_s10, %s91_s13  ;;  %p97_p2 = scmp.lt.s32.totalorder %s91_s13, %s91_s13 }
   0x7   :  { %p98_p3 = por %p97_p2, %p96_p1 }
   0x9   :  { %p99_p4 = pnand %p98_p3, %p92_p0 }
   0xb   :  { %102 = shalt.err (!%p99_p4)
}
   0xc   :  { %19 = dma.hbm_to_vmem [thread:$0]  %s176_s0, 1024, %s17_s10, [#allocation3]  }
   0xd   :  { %s111_s16 = scalar_lea.vmem %s27_s12, 512  ;;  %p116_p6 = scmp.lt.s32.totalorder %s27_s12, %s27_s12 }
   0xe   :  { %p112_p5 = scmp.ne.s32.totalorder %s27_s12, %s111_s16  ;;  %p117_p7 = scmp.lt.s32.totalorder %s111_s16, %s111_s16 }
  0x10   :  { %p118_p8 = por %p117_p7, %p116_p6 }
  0x12   :  { %p119_p9 = pnand %p118_p8, %p112_p5 }
  0x14   :  { %122 = shalt.err (!%p119_p9)
}
  0x15   :  { %29 = dma.hbm_to_vmem [thread:$0]  %s177_s1, 512, %s27_s12, [#allocation6]  }
  0x16   :  { %143 = dma.done.wait [#allocation3], 1024  }
  0x17   :  { %144 = vsyncadd [#allocation3], 4294966272 }
  0x18   :  { %145 = dma.done.wait [#allocation6], 512  }
  0x19   :  { %146 = vsyncadd [#allocation6], 4294966784  ;;  %v36_v0 = vld [vmem:[#allocation5] sm:$0xff]  ;;  %v37_v2 = vld [vmem:[#allocation5 + $0x8] sm:$0xff]  ;;  %s151_s0 = smov [#allocation7]  }
  0x1a   :  { %v40_v1 = vld [vmem:[#allocation2] sm:$0xff]  ;;  %v41_v4 = vld [vmem:[#allocation2 + $0x8] sm:$0xff]  ;;  %v38_v5 = vld [vmem:[#allocation5 + $0x10] sm:$0xff]  ;;  %s70_s19 = sshll.u32 %s151_s0, 4  ;;  %s71_s19 = int_to_ptr.vmem [resolvable:$true] %s70_s19 }
  0x1b   :  { %v44_v3 = vadd.f32 %v40_v1, %v36_v0  ;;  %v42_v6 = vld [vmem:[#allocation2 + $0x10] sm:$0xff]  ;;  %v45_v7 = vadd.f32 %v41_v4, %v37_v2  ;;  %v39_v9 = vld [vmem:[#allocation5 + $0x18] sm:$0xff]  ;;  %v52_v11 = vld [vmem:[#allocation2 + $0x20] sm:$0xff]  ;;  %s123_s1 = scalar_lea.vmem %s71_s19, 1024  ;;  %p128_p11 = scmp.lt.s32.totalorder %s71_s19, %s71_s19 }
  0x1c   :  { %v46_v8 = vadd.f32 %v42_v6, %v38_v5  ;;  %v43_v10 = vld [vmem:[#allocation2 + $0x18] sm:$0xff]  ;;  %v56_v13 = vadd.f32 %v52_v11, %v36_v0  ;;  %v53_v14 = vld [vmem:[#allocation2 + $0x28] sm:$0xff]  ;;  %v54_v15 = vld [vmem:[#allocation2 + $0x30] sm:$0xff]  ;;  %p124_p10 = scmp.ne.s32.totalorder %s71_s19, %s123_s1  ;;  %p129_p12 = scmp.lt.s32.totalorder %s123_s1, %s123_s1 }
  0x1d   :  { %48 = vst [vmem:[#allocation7] sm:$0xff] %v44_v3  ;;  %v47_v12 = vadd.f32 %v43_v10, %v39_v9  ;;  %v55_v16 = vld [vmem:[#allocation2 + $0x38] sm:$0xff]  ;;  %49 = vst [vmem:[#allocation7 + $0x8] sm:$0xff] %v45_v7  ;;  %v57_v17 = vadd.f32 %v53_v14, %v37_v2  ;;  %v58_v18 = vadd.f32 %v54_v15, %v38_v5 }
  0x1e   :  { %50 = vst [vmem:[#allocation7 + $0x10] sm:$0xff] %v46_v8  ;;  %v59_v19 = vadd.f32 %v55_v16, %v39_v9  ;;  %60 = vst [vmem:[#allocation7 + $0x20] sm:$0xff] %v56_v13  ;;  %p130_p13 = por %p129_p12, %p128_p11 }
  0x1f   :  { %51 = vst [vmem:[#allocation7 + $0x18] sm:$0xff] %v47_v12  ;;  %61 = vst [vmem:[#allocation7 + $0x28] sm:$0xff] %v57_v17 }
  0x20   :  { %62 = vst [vmem:[#allocation7 + $0x30] sm:$0xff] %v58_v18  ;;  %63 = vst [vmem:[#allocation7 + $0x38] sm:$0xff] %v59_v19  ;;  %p131_p0 = pnand %p130_p13, %p124_p10 }
  0x22   :  { %134 = shalt.err (!%p131_p0)
}
  0x23   :  { %73 = dma.vmem_to_hbm [thread:$0]  %s71_s19, 1024, %s178_s2, [#allocation4]  }
  0x24   :  { %147 = dma.done.wait [#allocation4], 1024  }
  0x25   :  { %148 = vsyncadd [#allocation4], 4294966272 }
  0x26   :  { %77 = vsyncpa [#allocation3], 1 }
  0x27   :  { %78 = vsyncpa [#allocation6], 1 }
  0x28   :  { %79 = vsyncpa [#allocation4], 1 }

</bundles_post_ra>
